<compile_context>
chip_gen: v7x
topology: tpu7x:2x2x1
jax: 0.10.0
libtpu: 0.0.40
codegen_flags: <defaults>
</compile_context>

<pallas_src>
import math

import jax
import jax.numpy as jnp
from jax.experimental import pallas as pl
from jax.experimental.pallas import tpu as pltpu

LEAKY_SLOPE = 0.01     # torch.nn.LeakyReLU default negative_slope
LANE = 128
SUBLANE = 8
MIB = 1024 * 1024


def _leaky_relu(v):
    return jnp.where(v > 0, v, LEAKY_SLOPE * v)


def _cdiv(a, b):
    return -(-a // b)


def _round_up(n, m):
    return _cdiv(n, m) * m


def _pad2d(a, rows, cols):
    r, c = a.shape
    return jnp.pad(a, ((0, rows - r), (0, cols - c)))


def _vmem_capacity_bytes():
    try:
        return int(pltpu.get_tpu_info().vmem_capacity_bytes)
    except Exception:
        return 64 * MIB          # conservative default (v7x per-core VMEM)


def _spec(shape, index_map, buffers=None):
    """BlockSpec with an optional explicit buffer count (falls back if unsupported)."""
    if buffers is not None and hasattr(pl, "Buffered"):
        try:
            return pl.BlockSpec(shape, index_map, pipeline_mode=pl.Buffered(buffers))
        except TypeError:
            pass
    return pl.BlockSpec(shape, index_map)


def _batch_tiling(batch, max_tile, fits_fn):
    """Sublane-aligned, balanced batch tiling.

    - tile shrunk (halved) until fits_fn(tile) says the VMEM working set fits,
    - >= 2 tiles when the batch exceeds 128 rows (megacore sharding on v7x),
    - tiles balanced so e.g. B=260 is not padded up to 512.
    """
    b8 = _round_up(batch, SUBLANE)
    tb = _round_up(min(b8, max_tile), SUBLANE)
    while tb > SUBLANE and not fits_fn(tb):
        tb = _round_up(tb // 2, SUBLANE)
    n = _cdiv(b8, tb)
    if n == 1 and b8 > LANE:               # allow v7x's 2 TCs to split the batch
        n = 2
    tb = _round_up(_cdiv(b8, n), SUBLANE)  # balanced tiles
    n = _cdiv(b8, tb)
    return tb * n, tb, n


def _weight_vmem_bytes(in_p, hid_p):
    # bf16 weights (single-buffered) + f32 biases
    return (in_p * hid_p + hid_p * hid_p + hid_p * in_p) * 2 + (hid_p + in_p) * 4


# --------------------------------------------------------------------------
# Parameter preparation (done once, outside the per-step path)
# --------------------------------------------------------------------------
def prepare_params(params, in_dim, hidden_dim):
    """Split W1 into x/h parts, transpose, zero-pad features to 128, cast to bf16."""
    in_p = _round_up(in_dim, LANE)
    hid_p = _round_up(hidden_dim, LANE)
    w1, b1, w2, b2 = params["w1"], params["b1"], params["w2"], params["b2"]

    w1x_t = jnp.transpose(w1[:, :in_dim])     # (in_dim,  hidden_dim)
    w1h_t = jnp.transpose(w1[:, in_dim:])     # (hidden,  hidden)
    w2_t = jnp.transpose(w2)                  # (hidden,  in_dim)

    return {
        "in_dim": in_dim, "hidden_dim": hidden_dim,
        "in_p": in_p, "hid_p": hid_p,
        # bf16 MXU operands (zero padding keeps math exact)
        "w1x": _pad2d(w1x_t, in_p, hid_p).astype(jnp.bfloat16),
        "w1h": _pad2d(w1h_t, hid_p, hid_p).astype(jnp.bfloat16),
        "w2":  _pad2d(w2_t, hid_p, in_p).astype(jnp.bfloat16),
        # biases stay f32 (added after the f32-accumulated dot)
        "b1":  _pad2d(b1.reshape(1, hidden_dim), 1, hid_p).astype(jnp.float32),
        "b2":  _pad2d(b2.reshape(1, in_dim), 1, in_p).astype(jnp.float32),
    }


# --------------------------------------------------------------------------
# Single-step kernel (matches ElmanRNN.forward exactly)
# --------------------------------------------------------------------------
def elman_step_kernel(x_ref, h_ref, w1x_ref, w1h_ref, b1_ref, w2_ref, b2_ref,
                      y_ref, h_out_ref):
    x = x_ref[...]                                   # (tb, in_p)  bf16
    h = h_ref[...]                                   # (tb, hid_p) bf16

    # cat([x, h]) @ W1.T  ==  x @ W1x.T + h @ W1h.T   (exactly)
    pre_h = (jnp.dot(x, w1x_ref[...], preferred_element_type=jnp.float32)
             + jnp.dot(h, w1h_ref[...], preferred_element_type=jnp.float32)
             + b1_ref[...])
    h_new = _leaky_relu(pre_h)                       # f32, (tb, hid_p)
    h_out_ref[...] = h_new.astype(h_out_ref.dtype)

    pre_y = (jnp.dot(h_new.astype(jnp.bfloat16), w2_ref[...],
                     preferred_element_type=jnp.float32)
             + b2_ref[...])
    y_ref[...] = _leaky_relu(pre_y).astype(y_ref.dtype)


def elman_rnn_forward(x, h, prep):
    """One ElmanRNN step. `h=None` -> ones, like the PyTorch module."""
    B, in_dim = x.shape
    hidden_dim = prep["hidden_dim"]
    in_p, hid_p = prep["in_p"], prep["hid_p"]
    assert in_dim == prep["in_dim"]

    if h is None:
        h = jnp.ones((B, hidden_dim), jnp.float32)

    w_bytes = _weight_vmem_bytes(in_p, hid_p)        # single-buffered weights

    def step_bytes(tb):
        xh = tb * (in_p + hid_p) * 2 * 2             # x & h tiles, bf16, double-buffered
        yh = tb * (in_p + hid_p) * 4 * 2             # y & h_new tiles, f32, double-buffered
        return w_bytes + xh + yh

    cap = _vmem_capacity_bytes()
    b_pad, tb, n_b = _batch_tiling(B, 256, lambda t: step_bytes(t) <= int(0.45 * cap))
    vmem_limit = int(min(max(2 * step_bytes(tb), 32 * MIB), int(0.9 * cap)))

    x_pad = _pad2d(x, b_pad, in_p).astype(jnp.bfloat16)
    h_pad = _pad2d(h, b_pad, hid_p).astype(jnp.bfloat16)

    y_pad, h_new_pad = pl.pallas_call(
        elman_step_kernel,
        out_shape=(
            jax.ShapeDtypeStruct((b_pad, in_p), jnp.float32),
            jax.ShapeDtypeStruct((b_pad, hid_p), jnp.float32),
        ),
        grid=(n_b,),
        in_specs=[
            pl.BlockSpec((tb, in_p), lambda b: (b, 0)),            # x tile
            pl.BlockSpec((tb, hid_p), lambda b: (b, 0)),           # h tile
            _spec((in_p, hid_p), lambda b: (0, 0), buffers=1),     # W1x.T (resident)
            _spec((hid_p, hid_p), lambda b: (0, 0), buffers=1),    # W1h.T (resident)
            _spec((1, hid_p), lambda b: (0, 0), buffers=1),        # b1
            _spec((hid_p, in_p), lambda b: (0, 0), buffers=1),     # W2.T  (resident)
            _spec((1, in_p), lambda b: (0, 0), buffers=1),         # b2
        ],
        out_specs=(
            pl.BlockSpec((tb, in_p), lambda b: (b, 0)),
            pl.BlockSpec((tb, hid_p), lambda b: (b, 0)),
        ),
        compiler_params=pltpu.CompilerParams(
            dimension_semantics=("parallel",),
            vmem_limit_bytes=vmem_limit),
    )(x_pad, h_pad, prep["w1x"], prep["w1h"], prep["b1"], prep["w2"], prep["b2"])

    return y_pad[:B, :in_dim], h_new_pad[:B, :hidden_dim]


# --------------------------------------------------------------------------
# Sequence kernel: whole recurrence in ONE pallas_call.
# grid = (batch_tiles ["parallel"], T ["arbitrary"]); per-batch-tile bf16 h carry
# in VMEM scratch; weights stay VMEM-resident (single-buffered) across the grid.
# --------------------------------------------------------------------------
def elman_seq_kernel(x_ref, h0_ref, w1x_ref, w1h_ref, b1_ref, w2_ref, b2_ref,
                     y_ref, h_out_ref, h_sc):
    t = pl.program_id(1)

    @pl.when(t == 0)
    def _():
        h_sc[...] = h0_ref[...]                      # init carry for this batch tile (bf16)

    x = x_ref[...]                                   # (tb, in_p) bf16
    h = h_sc[...]                                    # (tb, hid_p) bf16

    pre_h = (jnp.dot(x, w1x_ref[...], preferred_element_type=jnp.float32)
             + jnp.dot(h, w1h_ref[...], preferred_element_type=jnp.float32)
             + b1_ref[...])
    h_new = _leaky_relu(pre_h)                       # f32
    h_sc[...] = h_new.astype(jnp.bfloat16)           # bf16 carry (only consumer is the MXU)

    pre_y = (jnp.dot(h_new.astype(jnp.bfloat16), w2_ref[...],
                     preferred_element_type=jnp.float32)
             + b2_ref[...])
    y_ref[...] = _leaky_relu(pre_y).astype(y_ref.dtype)

    @pl.when(t == pl.num_programs(1) - 1)
    def _():
        h_out_ref[...] = h_new.astype(h_out_ref.dtype)   # only the last step matters


def elman_rnn_sequence(xs, h0, prep, out_dtype=jnp.float32):
    """Run T ElmanRNN steps over xs: (T, B, in_dim). Returns (ys, h_T)."""
    T, B, in_dim = xs.shape
    hidden_dim = prep["hidden_dim"]
    in_p, hid_p = prep["in_p"], prep["hid_p"]
    assert in_dim == prep["in_dim"]

    out_isize = jnp.dtype(out_dtype).itemsize
    w_bytes = _weight_vmem_bytes(in_p, hid_p)        # single-buffered weights

    def step_bytes(tb):
        x_b = tb * in_p * 2 * 2                      # x_t tile, bf16, double-buffered
        h0_b = tb * hid_p * 2 * 2                    # h0 tile, bf16, double-buffered
        y_b = tb * in_p * out_isize * 2              # y_t tile, double-buffered
        hT_b = tb * hid_p * 4 * 2                    # h_T tile, f32, double-buffered
        sc_b = tb * hid_p * 2                        # bf16 carry scratch
        return w_bytes + x_b + h0_b + y_b + hT_b + sc_b

    cap = _vmem_capacity_bytes()
    b_pad, tb, n_b = _batch_tiling(B, 256, lambda t: step_bytes(t) <= int(0.45 * cap))
    vmem_limit = int(min(max(2 * step_bytes(tb), 32 * MIB), int(0.9 * cap)))

    xs_pad = jnp.pad(xs, ((0, 0), (0, b_pad - B), (0, in_p - in_dim))
                     ).astype(jnp.bfloat16)
    h0_pad = _pad2d(h0, b_pad, hid_p).astype(jnp.bfloat16)

    ys_pad, h_fin_pad = pl.pallas_call(
        elman_seq_kernel,
        out_shape=(
            jax.ShapeDtypeStruct((T, b_pad, in_p), out_dtype),
            jax.ShapeDtypeStruct((b_pad, hid_p), jnp.float32),
        ),
        grid=(n_b, T),
        in_specs=[
            pl.BlockSpec((None, tb, in_p), lambda b, t: (t, b, 0)),  # x_t tile
            pl.BlockSpec((tb, hid_p), lambda b, t: (b, 0)),          # h0 tile
            _spec((in_p, hid_p), lambda b, t: (0, 0), buffers=1),    # W1x.T (resident)
            _spec((hid_p, hid_p), lambda b, t: (0, 0), buffers=1),   # W1h.T (resident)
            _spec((1, hid_p), lambda b, t: (0, 0), buffers=1),       # b1
            _spec((hid_p, in_p), lambda b, t: (0, 0), buffers=1),    # W2.T  (resident)
            _spec((1, in_p), lambda b, t: (0, 0), buffers=1),        # b2
        ],
        out_specs=(
            pl.BlockSpec((None, tb, in_p), lambda b, t: (t, b, 0)),  # y_t tile
            pl.BlockSpec((tb, hid_p), lambda b, t: (b, 0)),          # h_T tile (resident over T)
        ),
        scratch_shapes=[pltpu.VMEM((tb, hid_p), jnp.bfloat16)],      # per-batch-tile carry
        compiler_params=pltpu.CompilerParams(
            dimension_semantics=("parallel", "arbitrary"),
            vmem_limit_bytes=vmem_limit),
    )(xs_pad, h0_pad, prep["w1x"], prep["w1h"], prep["b1"], prep["w2"], prep["b2"])

    return ys_pad[:, :B, :in_dim], h_fin_pad[:B, :hidden_dim]


# --------------------------------------------------------------------------
# Init + pure-JAX reference
# --------------------------------------------------------------------------
def init_params(key, in_dim, hidden_dim):
    """Deterministic init matching nn.Linear shapes (uniform +/- 1/sqrt(fan_in))."""
    k1, k2, k3, k4 = jax.random.split(key, 4)
    fan1 = in_dim + hidden_dim
    bound1 = 1.0 / math.sqrt(fan1)
    bound2 = 1.0 / math.sqrt(hidden_dim)
    return {
        "w1": jax.random.uniform(k1, (hidden_dim, fan1), jnp.float32, -bound1, bound1),
        "b1": jax.random.uniform(k2, (hidden_dim,), jnp.float32, -bound1, bound1),
        "w2": jax.random.uniform(k3, (in_dim, hidden_dim), jnp.float32, -bound2, bound2),
        "b2": jax.random.uniform(k4, (in_dim,), jnp.float32, -bound2, bound2),
    }


def reference_forward(x, h, params):
    gate_in = jnp.concatenate([x, h], axis=1)
    pre_h = gate_in @ params["w1"].T + params["b1"]
    h_new = jnp.where(pre_h > 0, pre_h, LEAKY_SLOPE * pre_h)
    pre_y = h_new @ params["w2"].T + params["b2"]
    y = jnp.where(pre_y > 0, pre_y, LEAKY_SLOPE * pre_y)
    return y, h_new


def reference_sequence(xs, h0, params):
    h = h0
    ys = []
    for t in range(xs.shape[0]):
        y, h = reference_forward(xs[t], h, params)
        ys.append(y)
    return jnp.stack(ys), h


if __name__ == "__main__":
    key = jax.random.PRNGKey(0)
    B, in_dim, hidden_dim, T = 8, 16, 32, 8

    kx, ks, kp = jax.random.split(key, 3)
    params = init_params(kp, in_dim, hidden_dim)
    prep = prepare_params(params, in_dim, hidden_dim)   # hoisted: done once

    # ---- single step (h=None -> ones, like the PyTorch module) ----
    x = jax.random.normal(kx, (B, in_dim), jnp.float32)
    y, h_new = elman_rnn_forward(x, None, prep)
    jax.block_until_ready((y, h_new))

    h0 = jnp.ones((B, hidden_dim), jnp.float32)
    y_ref, h_ref = reference_forward(x, h0, params)
    assert jnp.allclose(y, y_ref, atol=2e-2, rtol=2e-2), "single-step y mismatch"
    assert jnp.allclose(h_new, h_ref, atol=2e-2, rtol=2e-2), "single-step h mismatch"

    # ---- full recurrence inside one pallas_call ----
    xs = jax.random.normal(ks, (T, B, in_dim), jnp.float32)
    ys, h_T = elman_rnn_sequence(xs, h0, prep, out_dtype=jnp.float32)
    jax.block_until_ready((ys, h_T))

    ys_ref, h_T_ref = reference_sequence(xs, h0, params)
    assert jnp.allclose(ys, ys_ref, atol=5e-2, rtol=5e-2), "sequence y mismatch"
    assert jnp.allclose(h_T, h_T_ref, atol=5e-2, rtol=5e-2), "sequence h mismatch"

    print("KERNEL_OK")
</pallas_src>

<mosaic_0001>
module attributes {stable_mosaic.version = 11 : i64} {
  func.func @elman_step_kernel(%arg0: i32, %arg1: memref<8x128xbf16, #tpu.memory_space<vmem>>, %arg2: memref<8x128xbf16, #tpu.memory_space<vmem>>, %arg3: memref<128x128xbf16, #tpu.memory_space<vmem>>, %arg4: memref<128x128xbf16, #tpu.memory_space<vmem>>, %arg5: memref<1x128xf32, #tpu.memory_space<vmem>>, %arg6: memref<128x128xbf16, #tpu.memory_space<vmem>>, %arg7: memref<1x128xf32, #tpu.memory_space<vmem>>, %arg8: memref<8x128xf32, #tpu.memory_space<vmem>>, %arg9: memref<8x128xf32, #tpu.memory_space<vmem>>) attributes {dimension_semantics = [#tpu.dimension_semantics<parallel>], iteration_bounds = array<i64: 1>, scalar_prefetch = 0 : i64, scratch_operands = 0 : i64, tpu.core_type = #tpu.core_type<tc>, window_params = [{transform_indices = @transform_0, window_bounds = array<i64: 8, 128>}, {transform_indices = @transform_1, window_bounds = array<i64: 8, 128>}, {pipeline_mode = #tpu.pipeline_mode<synchronous>, transform_indices = @transform_2, window_bounds = array<i64: 128, 128>}, {pipeline_mode = #tpu.pipeline_mode<synchronous>, transform_indices = @transform_3, window_bounds = array<i64: 128, 128>}, {pipeline_mode = #tpu.pipeline_mode<synchronous>, transform_indices = @transform_4, window_bounds = array<i64: 1, 128>}, {pipeline_mode = #tpu.pipeline_mode<synchronous>, transform_indices = @transform_5, window_bounds = array<i64: 128, 128>}, {pipeline_mode = #tpu.pipeline_mode<synchronous>, transform_indices = @transform_6, window_bounds = array<i64: 1, 128>}, {transform_indices = @transform_7, window_bounds = array<i64: 8, 128>}, {transform_indices = @transform_8, window_bounds = array<i64: 8, 128>}]} {
    %c0 = arith.constant 0 : index
    %c0_0 = arith.constant 0 : index
    %0 = vector.load %arg1[%c0, %c0_0] : memref<8x128xbf16, #tpu.memory_space<vmem>>, vector<8x128xbf16>
    %c0_1 = arith.constant 0 : index
    %c0_2 = arith.constant 0 : index
    %1 = vector.load %arg2[%c0_1, %c0_2] : memref<8x128xbf16, #tpu.memory_space<vmem>>, vector<8x128xbf16>
    %c0_3 = arith.constant 0 : index
    %c0_4 = arith.constant 0 : index
    %2 = vector.load %arg3[%c0_3, %c0_4] : memref<128x128xbf16, #tpu.memory_space<vmem>>, vector<128x128xbf16>
    %cst = arith.constant dense<0.000000e+00> : vector<8x128xf32>
    %3 = tpu.matmul %0, %2, %cst {dimension_numbers = #tpu.dot_dimension_numbers<[1], [0], [0], [1], [0, 0, 1, 1], [], []>} : vector<8x128xbf16>, vector<128x128xbf16>, vector<8x128xf32> -> vector<8x128xf32>
    %c0_5 = arith.constant 0 : index
    %c0_6 = arith.constant 0 : index
    %4 = vector.load %arg4[%c0_5, %c0_6] : memref<128x128xbf16, #tpu.memory_space<vmem>>, vector<128x128xbf16>
    %cst_7 = arith.constant dense<0.000000e+00> : vector<8x128xf32>
    %5 = tpu.matmul %1, %4, %cst_7 {dimension_numbers = #tpu.dot_dimension_numbers<[1], [0], [0], [1], [0, 0, 1, 1], [], []>} : vector<8x128xbf16>, vector<128x128xbf16>, vector<8x128xf32> -> vector<8x128xf32>
    %6 = arith.addf %3, %5 : vector<8x128xf32>
    %c0_8 = arith.constant 0 : index
    %c0_9 = arith.constant 0 : index
    %7 = vector.load %arg5[%c0_8, %c0_9] : memref<1x128xf32, #tpu.memory_space<vmem>>, vector<1x128xf32>
    %8 = vector.broadcast %7 : vector<1x128xf32> to vector<8x128xf32>
    %9 = arith.addf %6, %8 : vector<8x128xf32>
    %cst_10 = arith.constant 0.000000e+00 : f32
    %10 = vector.broadcast %cst_10 : f32 to vector<8x128xf32>
    %11 = arith.cmpf ogt, %9, %10 : vector<8x128xf32>
    %cst_11 = arith.constant 0.00999999977 : f32
    %12 = vector.broadcast %cst_11 : f32 to vector<8x128xf32>
    %13 = arith.mulf %12, %9 : vector<8x128xf32>
    %14 = arith.select %11, %9, %13 : vector<8x128xi1>, vector<8x128xf32>
    %c0_12 = arith.constant 0 : index
    %c0_13 = arith.constant 0 : index
    %15 = vector.load %arg9[%c0_12, %c0_13] : memref<8x128xf32, #tpu.memory_space<vmem>>, vector<8x128xf32>
    tpu.vector_store %arg9[%c0_12, %c0_13], %14 {strides = array<i32>} : memref<8x128xf32, #tpu.memory_space<vmem>>, vector<8x128xf32>,
    %16 = arith.truncf %14 : vector<8x128xf32> to vector<8x128xbf16>
    %c0_14 = arith.constant 0 : index
    %c0_15 = arith.constant 0 : index
    %17 = vector.load %arg6[%c0_14, %c0_15] : memref<128x128xbf16, #tpu.memory_space<vmem>>, vector<128x128xbf16>
    %cst_16 = arith.constant dense<0.000000e+00> : vector<8x128xf32>
    %18 = tpu.matmul %16, %17, %cst_16 {dimension_numbers = #tpu.dot_dimension_numbers<[1], [0], [0], [1], [0, 0, 1, 1], [], []>} : vector<8x128xbf16>, vector<128x128xbf16>, vector<8x128xf32> -> vector<8x128xf32>
    %c0_17 = arith.constant 0 : index
    %c0_18 = arith.constant 0 : index
    %19 = vector.load %arg7[%c0_17, %c0_18] : memref<1x128xf32, #tpu.memory_space<vmem>>, vector<1x128xf32>
    %20 = vector.broadcast %19 : vector<1x128xf32> to vector<8x128xf32>
    %21 = arith.addf %18, %20 : vector<8x128xf32>
    %cst_19 = arith.constant 0.000000e+00 : f32
    %22 = vector.broadcast %cst_19 : f32 to vector<8x128xf32>
    %23 = arith.cmpf ogt, %21, %22 : vector<8x128xf32>
    %cst_20 = arith.constant 0.00999999977 : f32
    %24 = vector.broadcast %cst_20 : f32 to vector<8x128xf32>
    %25 = arith.mulf %24, %21 : vector<8x128xf32>
    %26 = arith.select %23, %21, %25 : vector<8x128xi1>, vector<8x128xf32>
    %c0_21 = arith.constant 0 : index
    %c0_22 = arith.constant 0 : index
    %27 = vector.load %arg8[%c0_21, %c0_22] : memref<8x128xf32, #tpu.memory_space<vmem>>, vector<8x128xf32>
    tpu.vector_store %arg8[%c0_21, %c0_22], %26 {strides = array<i32>} : memref<8x128xf32, #tpu.memory_space<vmem>>, vector<8x128xf32>,
    return
  }
  func.func @transform_0(%arg0: i32) -> (i32, i32) {
    %c0_i32 = arith.constant 0 : i32
    %c0_i32_0 = arith.constant 0 : i32
    return %arg0, %c0_i32 : i32, i32
  }
  func.func @transform_1(%arg0: i32) -> (i32, i32) {
    %c0_i32 = arith.constant 0 : i32
    %c0_i32_0 = arith.constant 0 : i32
    return %arg0, %c0_i32 : i32, i32
  }
  func.func @transform_2(%arg0: i32) -> (i32, i32) {
    %c0_i32 = arith.constant 0 : i32
    %c0_i32_0 = arith.constant 0 : i32
    %c0_i32_1 = arith.constant 0 : i32
    return %c0_i32, %c0_i32_0 : i32, i32
  }
  func.func @transform_3(%arg0: i32) -> (i32, i32) {
    %c0_i32 = arith.constant 0 : i32
    %c0_i32_0 = arith.constant 0 : i32
    %c0_i32_1 = arith.constant 0 : i32
    return %c0_i32, %c0_i32_0 : i32, i32
  }
  func.func @transform_4(%arg0: i32) -> (i32, i32) {
    %c0_i32 = arith.constant 0 : i32
    %c0_i32_0 = arith.constant 0 : i32
    %c0_i32_1 = arith.constant 0 : i32
    return %c0_i32, %c0_i32_0 : i32, i32
  }
  func.func @transform_5(%arg0: i32) -> (i32, i32) {
    %c0_i32 = arith.constant 0 : i32
    %c0_i32_0 = arith.constant 0 : i32
    %c0_i32_1 = arith.constant 0 : i32
    return %c0_i32, %c0_i32_0 : i32, i32
  }
  func.func @transform_6(%arg0: i32) -> (i32, i32) {
    %c0_i32 = arith.constant 0 : i32
    %c0_i32_0 = arith.constant 0 : i32
    %c0_i32_1 = arith.constant 0 : i32
    return %c0_i32, %c0_i32_0 : i32, i32
  }
  func.func @transform_7(%arg0: i32) -> (i32, i32) {
    %c0_i32 = arith.constant 0 : i32
    %c0_i32_0 = arith.constant 0 : i32
    return %arg0, %c0_i32 : i32, i32
  }
  func.func @transform_8(%arg0: i32) -> (i32, i32) {
    %c0_i32 = arith.constant 0 : i32
    %c0_i32_0 = arith.constant 0 : i32
    return %arg0, %c0_i32 : i32, i32
  }
}

</mosaic_0001>

<bundles_post_ra>
// kernel: tpu_custom_call.1
= control target key start
LH: loop header
LB: loop body
LE: loop exit
PB: predicated region body
PF: predicated region fallthrough
CT: control target
= control target key end

     0   :  { %14 = vsyncpa [#allocation3], 0  ;;  %s961_s0 = inlined_call_operand.hbm [shape: bf16[8,128], index: 0, kind: input, shape index: {}]   ;;  %s962_s1 = inlined_call_operand.hbm [shape: bf16[8,128], index: 1, kind: input, shape index: {}]   ;;  %s963_s2 = inlined_call_operand.hbm [shape: bf16[128,128], index: 2, kind: input, shape index: {}]   ;;  %s964_s3 = inlined_call_operand.hbm [shape: bf16[128,128], index: 3, kind: input, shape index: {}]   ;;  %s965_s4 = inlined_call_operand.vmem [shape: f32[1,128], index: 4, kind: input, shape index: {}]   ;;  %s966_s5 = inlined_call_operand.hbm [shape: bf16[128,128], index: 5, kind: input, shape index: {}]   ;;  %s967_s6 = inlined_call_operand.vmem [shape: f32[1,128], index: 6, kind: input, shape index: {}]   ;;  %s968_s7 = inlined_call_operand.hbm [shape: f32[8,128], index: 7, kind: output, shape index: {0}]   ;;  %s969_s8 = inlined_call_operand.hbm [shape: f32[8,128], index: 8, kind: output, shape index: {1}]  }
   0x1   :  { %15 = vsyncpa [#allocation6], 0 }
   0x2   :  { %16 = vsyncpa [#allocation9], 0 }
   0x3   :  { %17 = vsyncpa [#allocation4], 0 }
   0x4   :  { %18 = vsyncpa [#allocation13], 0  ;;  %s776_s27 = smov [#allocation5]   ;;  %s612_s9 = scalar_lea.hbm %s962_s1, 64 }
   0x5   :  { %s35_s28 = sshll.u32 %s776_s27, 4  ;;  %p613_p0 = scmp.ne.s32.totalorder %s962_s1, %s612_s9  ;;  %s36_s28 = int_to_ptr.vmem [resolvable:$true] %s35_s28 }
   0x6   :  { %p616_p1 = scmp.lt.u32.totalorder %s612_s9, %s962_s1 }
   0x8   :  { %p618_p2 = pnand %p616_p1, %p613_p0 }
   0xa   :  { %621 = shalt.err (!%p618_p2)
}
   0xb   :  { %s622_s14 = scalar_lea.vmem %s36_s28, 64  ;;  %p627_p4 = scmp.lt.s32.totalorder %s36_s28, %s36_s28 }
   0xc   :  { %p623_p3 = scmp.ne.s32.totalorder %s36_s28, %s622_s14  ;;  %p628_p5 = scmp.lt.s32.totalorder %s622_s14, %s622_s14 }
   0xe   :  { %p629_p6 = por %p628_p5, %p627_p4 }
  0x10   :  { %p630_p7 = pnand %p629_p6, %p623_p3 }
  0x12   :  { %633 = shalt.err (!%p630_p7)
}
  0x13   :  { %38 = dma.hbm_to_vmem [thread:$0]  %s962_s1, 64, %s36_s28, [#allocation6]  }
  0x14   :  { %s777_s17 = smov [#allocation8]   ;;  %s778_s19 = smov [#allocation2]  }
  0x15   :  { %s56_s18 = sshll.u32 %s777_s17, 4  ;;  %s25_s20 = sshll.u32 %s778_s19, 4  ;;  %s57_s18 = int_to_ptr.vmem [resolvable:$true] %s56_s18  ;;  %s26_s20 = int_to_ptr.vmem [resolvable:$true] %s25_s20 }
  0x16   :  { %s634_s23 = scalar_lea.hbm %s964_s3, 1024 }
  0x17   :  { %p635_p8 = scmp.ne.s32.totalorder %s964_s3, %s634_s23  ;;  %p638_p9 = scmp.lt.u32.totalorder %s634_s23, %s964_s3 }
  0x19   :  { %p640_p10 = pnand %p638_p9, %p635_p8 }
  0x1b   :  { %643 = shalt.err (!%p640_p10)
}
  0x1c   :  { %s644_s1 = scalar_lea.vmem %s57_s18, 1024  ;;  %p649_p12 = scmp.lt.s32.totalorder %s57_s18, %s57_s18 }
  0x1d   :  { %p645_p11 = scmp.ne.s32.totalorder %s57_s18, %s644_s1  ;;  %p650_p13 = scmp.lt.s32.totalorder %s644_s1, %s644_s1 }
  0x1f   :  { %p651_p0 = por %p650_p13, %p649_p12 }
  0x21   :  { %p652_p1 = pnand %p651_p0, %p645_p11 }
  0x23   :  { %655 = shalt.err (!%p652_p1)
}
  0x24   :  { %s779_s28 = smov 64   ;;  %s780_s29 = smov 4  }
  0x25   :  { %62 = dma.hbm_to_vmem [thread:$0]  %s964_s3, 1024, %s57_s18, [#allocation9], %s779_s28, %s779_s28, %s780_s29  }
  0x26   :  { %s656_s12 = scalar_lea.hbm %s961_s0, 64 }
  0x27   :  { %p657_p2 = scmp.ne.s32.totalorder %s961_s0, %s656_s12  ;;  %p660_p3 = scmp.lt.u32.totalorder %s656_s12, %s961_s0 }
  0x29   :  { %p662_p4 = pnand %p660_p3, %p657_p2 }
  0x2b   :  { %665 = shalt.err (!%p662_p4)
}
  0x2c   :  { %s666_s17 = scalar_lea.vmem %s26_s20, 64  ;;  %p671_p6 = scmp.lt.s32.totalorder %s26_s20, %s26_s20 }
  0x2d   :  { %p667_p5 = scmp.ne.s32.totalorder %s26_s20, %s666_s17  ;;  %p672_p7 = scmp.lt.s32.totalorder %s666_s17, %s666_s17 }
  0x2f   :  { %p673_p8 = por %p672_p7, %p671_p6 }
  0x31   :  { %p674_p9 = pnand %p673_p8, %p667_p5 }
  0x33   :  { %677 = shalt.err (!%p674_p9)
}
  0x34   :  { %28 = dma.hbm_to_vmem [thread:$0]  %s961_s0, 64, %s26_s20, [#allocation3]  }
  0x35   :  { %s781_s19 = smov [#allocation7]   ;;  %s782_s22 = smov [#allocation10]  }
  0x36   :  { %s44_s21 = sshll.u32 %s781_s19, 4  ;;  %s70_s23 = sshll.u32 %s782_s22, 4  ;;  %s45_s21 = int_to_ptr.vmem [resolvable:$true] %s44_s21  ;;  %s71_s23 = int_to_ptr.vmem [resolvable:$true] %s70_s23 }
  0x37   :  { %s678_s26 = scalar_lea.hbm %s963_s2, 1024 }
  0x38   :  { %p679_p10 = scmp.ne.s32.totalorder %s963_s2, %s678_s26  ;;  %p682_p11 = scmp.lt.u32.totalorder %s678_s26, %s963_s2 }
  0x3a   :  { %p684_p12 = pnand %p682_p11, %p679_p10 }
  0x3c   :  { %687 = shalt.err (!%p684_p12)
}
  0x3d   :  { %s688_s0 = scalar_lea.vmem %s45_s21, 1024  ;;  %p693_p0 = scmp.lt.s32.totalorder %s45_s21, %s45_s21 }
  0x3e   :  { %p689_p13 = scmp.ne.s32.totalorder %s45_s21, %s688_s0  ;;  %p694_p1 = scmp.lt.s32.totalorder %s688_s0, %s688_s0 }
  0x40   :  { %p695_p2 = por %p694_p1, %p693_p0 }
  0x42   :  { %p696_p3 = pnand %p695_p2, %p689_p13 }
  0x44   :  { %699 = shalt.err (!%p696_p3)
}
  0x45   :  { %50 = dma.hbm_to_vmem [thread:$0]  %s963_s2, 1024, %s45_s21, [#allocation6], %s779_s28, %s779_s28, %s780_s29  }
  0x46   :  { %s700_s13 = scalar_lea.hbm %s966_s5, 1024 }
  0x47   :  { %p701_p4 = scmp.ne.s32.totalorder %s966_s5, %s700_s13  ;;  %p704_p5 = scmp.lt.u32.totalorder %s700_s13, %s966_s5 }
  0x49   :  { %p706_p6 = pnand %p704_p5, %p701_p4 }
  0x4b   :  { %709 = shalt.err (!%p706_p6)
}
  0x4c   :  { %s710_s3 = scalar_lea.vmem %s71_s23, 1024  ;;  %p715_p8 = scmp.lt.s32.totalorder %s71_s23, %s71_s23 }
  0x4d   :  { %p711_p7 = scmp.ne.s32.totalorder %s71_s23, %s710_s3  ;;  %p716_p9 = scmp.lt.s32.totalorder %s710_s3, %s710_s3 }
  0x4f   :  { %p717_p10 = por %p716_p9, %p715_p8 }
  0x51   :  { %p718_p11 = pnand %p717_p10, %p711_p7 }
  0x53   :  { %721 = shalt.err (!%p718_p11)
}
  0x54   :  { %76 = dma.hbm_to_vmem [thread:$0]  %s966_s5, 1024, %s71_s23, [#allocation9], %s779_s28, %s779_s28, %s780_s29  }
  0x55   :  { %766 = dma.done.wait [#allocation3], 64  }
  0x56   :  { %767 = vsyncadd [#allocation3], 4294967232 }
  0x57   :  { %768 = dma.done.wait [#allocation6], 1088  }
  0x58   :  { %769 = vsyncadd [#allocation6], 4294966208 }
  0x59   :  { %770 = dma.done.wait [#allocation9], 2048  }
  0x5a   :  { %771 = vsyncadd [#allocation9], 4294965248  ;;  %v783_v0 = vmov 0.0   ;;  %vm784_vm0 = vmmov 0   ;;  %v588_v1 = vld [vmem:[#allocation8] sm:$0xff]   ;;  %v590_v3 = vld [vmem:[#allocation8 + $0x8] sm:$0xff]  }
  0x5b   :  { %517 = vmatprep.subr.bf16.mxu0 %v783_v0  ;;  %537 = vmatprep.subr.bf16.mxu1 %v783_v0  ;;  %v589_v2 = vld [vmem:[#allocation7] sm:$0xff]   ;;  %v591_v4 = vld [vmem:[#allocation7 + $0x8] sm:$0xff]   ;;  %v592_v5 = vld [vmem:[#allocation8 + $0x10] sm:$0xff]   ;;  %s785_s29 = smov [#allocation12]  }
  0x5c   :  { %533 = vmatprep.mubr.msk.bf16.mxu0 %vm784_vm0, %v783_v0  ;;  %553 = vmatprep.mubr.msk.bf16.mxu1 %vm784_vm0, %v783_v0  ;;  %v593_v6 = vld [vmem:[#allocation7 + $0x10] sm:$0xff]   ;;  %v594_v7 = vld [vmem:[#allocation8 + $0x18] sm:$0xff]   ;;  %v596_v9 = vld [vmem:[#allocation8 + $0x20] sm:$0xff]   ;;  %s449_s19 = sshll.u32 %s785_s29, 4  ;;  %s450_s19 = int_to_ptr.vmem [resolvable:$true] %s449_s19 }
  0x5d   :  { %518 = vmatpush3.bf16.msra.mxu0 %v588_v1  ;;  %538 = vmatpush3.bf16.msra.mxu1 %v589_v2  ;;  %v595_v8 = vld [vmem:[#allocation7 + $0x18] sm:$0xff]   ;;  %v597_v10 = vld [vmem:[#allocation7 + $0x20] sm:$0xff]   ;;  %v598_v11 = vld [vmem:[#allocation8 + $0x28] sm:$0xff]   ;;  %s722_s21 = scalar_lea.vmem %s450_s19, 128  ;;  %p727_p13 = scmp.lt.s32.totalorder %s450_s19, %s450_s19 }
  0x5e   :  { %519 = vmatprep.subr.bf16.mxu0 %v783_v0  ;;  %539 = vmatprep.subr.bf16.mxu1 %v783_v0  ;;  %v599_v12 = vld [vmem:[#allocation7 + $0x28] sm:$0xff]   ;;  %v600_v13 = vld [vmem:[#allocation8 + $0x30] sm:$0xff]   ;;  %v602_v15 = vld [vmem:[#allocation8 + $0x38] sm:$0xff]   ;;  %p723_p12 = scmp.ne.s32.totalorder %s450_s19, %s722_s21  ;;  %p728_p0 = scmp.lt.s32.totalorder %s722_s21, %s722_s21 }
  0x5f   :  { %v601_v14 = vld [vmem:[#allocation7 + $0x30] sm:$0xff]   ;;  %v603_v16 = vld [vmem:[#allocation7 + $0x38] sm:$0xff]   ;;  %v604_v18 = vld [vmem:[#allocation10] sm:$0xff]  }
  0x60   :  { %v96_v17 = vld [vmem:[#allocation5] sm:$0xf]  ;;  %v95_v19 = vld [vmem:[#allocation2] sm:$0xf]  ;;  %v605_v20 = vld [vmem:[#allocation10 + $0x8] sm:$0xff]   ;;  %p729_p1 = por %p728_p0, %p727_p13 }
  0x61   :  { %520 = vmatpush3.bf16.msra.mxu0 %v590_v3  ;;  %540 = vmatpush3.bf16.msra.mxu1 %v591_v4  ;;  %v606_v21 = vld [vmem:[#allocation10 + $0x10] sm:$0xff]   ;;  %v607_v22 = vld [vmem:[#allocation10 + $0x18] sm:$0xff]   ;;  %v608_v23 = vld [vmem:[#allocation10 + $0x20] sm:$0xff]  }
  0x62   :  { %521 = vmatprep.subr.bf16.mxu0 %v783_v0  ;;  %541 = vmatprep.subr.bf16.mxu1 %v783_v0  ;;  %v609_v24 = vld [vmem:[#allocation10 + $0x28] sm:$0xff]   ;;  %v610_v25 = vld [vmem:[#allocation10 + $0x30] sm:$0xff]   ;;  %v611_v26 = vld [vmem:[#allocation10 + $0x38] sm:$0xff]   ;;  %p730_p2 = pnand %p729_p1, %p723_p12 }
  0x63   :  { %v480_v29 = vld [vmem:[%s965_s4] ss:$0 sm:$0xff] }
  0x65   :  { %522 = vmatpush3.bf16.msra.mxu0 %v592_v5  ;;  %542 = vmatpush3.bf16.msra.mxu1 %v593_v6 }
  0x66   :  { %523 = vmatprep.subr.bf16.mxu0 %v783_v0  ;;  %543 = vmatprep.subr.bf16.mxu1 %v783_v0 }
  0x69   :  { %524 = vmatpush3.bf16.msra.mxu0 %v594_v7  ;;  %544 = vmatpush3.bf16.msra.mxu1 %v595_v8 }
  0x6a   :  { %525 = vmatprep.subr.bf16.mxu0 %v783_v0  ;;  %545 = vmatprep.subr.bf16.mxu1 %v783_v0 }
  0x6d   :  { %526 = vmatpush3.bf16.msra.mxu0 %v596_v9  ;;  %546 = vmatpush3.bf16.msra.mxu1 %v597_v10 }
  0x6e   :  { %527 = vmatprep.subr.bf16.mxu0 %v783_v0  ;;  %547 = vmatprep.subr.bf16.mxu1 %v783_v0 }
  0x71   :  { %528 = vmatpush3.bf16.msra.mxu0 %v598_v11  ;;  %548 = vmatpush3.bf16.msra.mxu1 %v599_v12 }
  0x72   :  { %529 = vmatprep.subr.bf16.mxu0 %v783_v0  ;;  %549 = vmatprep.subr.bf16.mxu1 %v783_v0 }
  0x75   :  { %530 = vmatpush3.bf16.msra.mxu0 %v600_v13  ;;  %550 = vmatpush3.bf16.msra.mxu1 %v601_v14 }
  0x76   :  { %531 = vmatprep.subr.bf16.mxu0 %v783_v0  ;;  %551 = vmatprep.subr.bf16.mxu1 %v783_v0 }
  0x79   :  { %532 = vmatpush3.bf16.msra.mxu0 %v602_v15  ;;  %552 = vmatpush3.bf16.msra.mxu1 %v603_v16 }
  0x7a   :  { %557 = vmatprep.subr.bf16.mxu0 %v783_v0 }
  0x7c   :  { %534 = vmatmul.mubr.bf16.vlgmr.msra.gmra.mrb[0].mxu0 %v96_v17  ;;  %554 = vmatmul.mubr.bf16.vlgmr.msra.gmra.mrb[0].mxu1 %v95_v19 }
  0x7d   :  { %558 = vmatpush3.bf16.msra.mxu0 %v604_v18  ;;  %573 = vmatprep.mubr.msk.bf16.mxu0 %vm784_vm0, %v783_v0 }
  0x7e   :  { %559 = vmatprep.subr.bf16.mxu0 %v783_v0 }
  0x81   :  { %560 = vmatpush3.bf16.msra.mxu0 %v605_v20 }
  0x82   :  { %561 = vmatprep.subr.bf16.mxu0 %v783_v0 }
  0x85   :  { %562 = vmatpush3.bf16.msra.mxu0 %v606_v21 }
  0x86   :  { %563 = vmatprep.subr.bf16.mxu0 %v783_v0 }
  0x89   :  { %564 = vmatpush3.bf16.msra.mxu0 %v607_v22 }
  0x8a   :  { %565 = vmatprep.subr.bf16.mxu0 %v783_v0 }
  0x8d   :  { %566 = vmatpush3.bf16.msra.mxu0 %v608_v23 }
  0x8e   :  { %567 = vmatprep.subr.bf16.mxu0 %v783_v0 }
  0x91   :  { %568 = vmatpush3.bf16.msra.mxu0 %v609_v24 }
  0x92   :  { %569 = vmatprep.subr.bf16.mxu0 %v783_v0 }
  0x95   :  { %570 = vmatpush3.bf16.msra.mxu0 %v610_v25 }
  0x96   :  { %571 = vmatprep.subr.bf16.mxu0 %v783_v0 }
  0x99   :  { %572 = vmatpush3.bf16.msra.mxu0 %v611_v26 }
 0x14f   :  { %v211_v27 = vpop.f32.mrb[0].mxu0  ;;  %v299_v28 = vpop.f32.mrb[0].mxu1 }
 0x150   :  { %v535_v30 = vpop.f32.mrb[1].mxu0  ;;  %v300_v31 = vadd.f32 %v299_v28, %v211_v27  ;;  %v555_v32 = vpop.f32.mrb[1].mxu1 }
 0x151   :  { %v214_v33 = vpop.f32.mrb[2].mxu0  ;;  %v302_v34 = vpop.f32.mrb[2].mxu1 }
 0x152   :  { %v536_v35 = vpop.f32.mrb[3].mxu0  ;;  %v312_v36 = vadd.f32 %v480_v29, %v300_v31  ;;  %v556_v37 = vpop.f32.mrb[3].mxu1 }
 0x154   :  { %vm313_vm1 = vcmp.gt.f32.partialorder %v312_v36, 0.0  ;;  %v314_v38 = vmul.f32 0.01, %v312_v36 }
 0x156   :  { %v315_v39 = vsel %vm313_vm1, %v312_v36, %v314_v38 }
 0x157   :  { %316 = vst [vmem:[#allocation12] sm:$0xff] %v315_v39  ;;  %v317_v40 = vpack.c.bf16 %v315_v39, %v315_v39 }
 0x159   :  { %574 = vmatmul.mubr.bf16.vlgmr.msra.gmra.mrb[4].mxu0 %v317_v40 }
 0x15a   :  { %733 = shalt.err (!%p730_p2)
}
 0x15b   :  { %s734_s23 = scalar_lea.hbm %s969_s8, 128 }
 0x15c   :  { %p735_p3 = scmp.ne.s32.totalorder %s969_s8, %s734_s23  ;;  %p738_p4 = scmp.lt.u32.totalorder %s734_s23, %s969_s8 }
 0x15e   :  { %p740_p5 = pnand %p738_p4, %p735_p3 }
 0x160   :  { %743 = shalt.err (!%p740_p5)
}
 0x161   :  { %452 = dma.vmem_to_hbm [thread:$0]  %s450_s19, 128, %s969_s8, [#allocation13]   ;;  %v481_v41 = vld [vmem:[%s967_s6] ss:$0 sm:$0xff] }
 0x162   :  { %s786_s20 = smov [#allocation11]  }
 0x163   :  { %s439_s10 = sshll.u32 %s786_s20, 4  ;;  %s440_s10 = int_to_ptr.vmem [resolvable:$true] %s439_s10 }
 0x164   :  { %s744_s11 = scalar_lea.vmem %s440_s10, 128  ;;  %p749_p7 = scmp.lt.s32.totalorder %s440_s10, %s440_s10 }
 0x165   :  { %p745_p6 = scmp.ne.s32.totalorder %s440_s10, %s744_s11  ;;  %p750_p8 = scmp.lt.s32.totalorder %s744_s11, %s744_s11 }
 0x167   :  { %p751_p9 = por %p750_p8, %p749_p7 }
 0x169   :  { %p752_p10 = pnand %p751_p9, %p745_p6 }
 0x22c   :  { %v423_v42 = vpop.f32.mrb[4].mxu0 }
 0x22d   :  { %v424_v43 = vadd.f32 %v481_v41, %v423_v42  ;;  %v575_v44 = vpop.f32.mrb[5].mxu0 }
 0x22e   :  { %v426_v45 = vpop.f32.mrb[6].mxu0 }
 0x22f   :  { %v430_v46 = vmul.f32 0.01, %v424_v43  ;;  %v576_v47 = vpop.f32.mrb[7].mxu0  ;;  %vm429_vm2 = vcmp.gt.f32.partialorder %v424_v43, 0.0 }
 0x231   :  { %v431_v48 = vsel %vm429_vm2, %v424_v43, %v430_v46 }
 0x232   :  { %432 = vst [vmem:[#allocation11] sm:$0xff] %v431_v48 }
 0x233   :  { %755 = shalt.err (!%p752_p10)
}
 0x234   :  { %s756_s12 = scalar_lea.hbm %s968_s7, 128 }
 0x235   :  { %p757_p11 = scmp.ne.s32.totalorder %s968_s7, %s756_s12  ;;  %p760_p12 = scmp.lt.u32.totalorder %s756_s12, %s968_s7 }
 0x237   :  { %p762_p13 = pnand %p760_p12, %p757_p11 }
 0x239   :  { %765 = shalt.err (!%p762_p13)
}
 0x23a   :  { %442 = dma.vmem_to_hbm [thread:$0]  %s440_s10, 128, %s968_s7, [#allocation4]  }
 0x23b   :  { %772 = dma.done.wait [#allocation4], 128  }
 0x23c   :  { %773 = vsyncadd [#allocation4], 4294967168 }
 0x23d   :  { %774 = dma.done.wait [#allocation13], 128  }
 0x23e   :  { %775 = vsyncadd [#allocation13], 4294967168 }
 0x23f   :  { %459 = vsyncpa [#allocation3], 1 }
 0x240   :  { %460 = vsyncpa [#allocation6], 1 }
 0x241   :  { %461 = vsyncpa [#allocation9], 1 }
 0x242   :  { %462 = vsyncpa [#allocation4], 1 }
 0x243   :  { %463 = vsyncpa [#allocation13], 1 }

</bundles_post_ra>
